<compile_context>
chip_gen: v5e
topology: v5e:2x2
jax: 0.10.0
libtpu: 0.0.40
codegen_flags: <defaults>
</compile_context>

<pallas_src>
import functools

import jax
import jax.numpy as jnp
from jax.experimental import pallas as pl
from jax.experimental.pallas import tpu as pltpu


# --------------------------------------------------------------------------- #
# Hardware / tiling helpers
# --------------------------------------------------------------------------- #
def _vmem_capacity_bytes():
    """Physical VMEM per core; conservative (v7x) fallback if the query fails."""
    try:
        info = pltpu.get_tpu_info()
        return int(getattr(info, "vmem_capacity_bytes"))
    except Exception:
        return 64 << 20


def _pick_tile_l(B, Cg, L, target_bytes):
    """Largest tile_L dividing L, multiple of 128 (lane width), block under
    ~target_bytes. Caller guarantees L is a multiple of 128 when it is large."""
    bytes_per_l = B * Cg * 4
    if L % 128 != 0 or L * bytes_per_l <= target_bytes:
        return L
    max_tl = max(128, (target_bytes // bytes_per_l) // 128 * 128)
    best = 128
    t = 256
    while t <= min(L, max_tl):
        if L % t == 0:
            best = t
        t += 128
    return best


def _newton_whiten_matrix(sigma, eye, T):
    """Newton-Schulz inverse sqrt of the trace-normalized sigma (16x16 f32)."""
    trace_inv = 1.0 / jnp.sum(sigma * eye)
    sigma_n = sigma * trace_inv
    p = eye
    for _ in range(T):
        p2 = jnp.dot(p, p, preferred_element_type=jnp.float32)
        p3 = jnp.dot(p2, p, preferred_element_type=jnp.float32)
        p = 1.5 * p - 0.5 * jnp.dot(p3, sigma_n, preferred_element_type=jnp.float32)
    return p * jnp.sqrt(trace_inv)


# --------------------------------------------------------------------------- #
# Fused single-pass kernel (group slab resident in VMEM)
# --------------------------------------------------------------------------- #
def _fused_kernel(x_ref, w_ref, b_ref, o_ref, *, T, eps, eps_bn):
    x = x_ref[...].astype(jnp.float32)                       # (B, Cg, L)
    bsz, d, ln = x.shape
    mf = jnp.float32(bsz * ln)
    eye = jnp.eye(d, dtype=jnp.float32)

    # exact centering (no one-pass cancellation issues on the fused path)
    mean = jnp.sum(jnp.sum(x, axis=0), axis=1, keepdims=True) / mf   # (Cg, 1)
    xc = x - mean[None]                                              # (B, Cg, L)

    # centered gram via per-batch NT matmuls (no batched intermediate)
    g = jnp.einsum('cl,kl->ck', xc[0], xc[0], preferred_element_type=jnp.float32)
    for bi in range(1, bsz):
        g += jnp.einsum('cl,kl->ck', xc[bi], xc[bi],
                        preferred_element_type=jnp.float32)

    # per-channel sum of squares = gram diagonal
    sumsq = jnp.sum(g * eye, axis=1, keepdims=True)                  # (Cg, 1)
    std = jnp.sqrt(sumsq / (mf - 1.0)) + eps_bn
    rstd = 1.0 / std
    rstd_row = jnp.sum(rstd * eye, axis=0, keepdims=True)            # (1, Cg)

    # sigma built with broadcasted VPU elementwise (no diag-matrix MXU chain)
    gram_cs = g * rstd * rstd_row
    sigma = eye * eps + gram_cs * (1.0 / mf)
    wm = _newton_whiten_matrix(sigma, eye, T)

    # fold 1/std and the affine weight into the whitening matrix:
    #   y = diag(w) . wm . diag(rstd) . xc + b
    w = w_ref[0]                                                     # (Cg, 1)
    b = b_ref[0]                                                     # (Cg, 1)
    wmat = (wm * rstd_row) * w
    for bi in range(bsz):
        o_ref[bi] = (jnp.dot(wmat, xc[bi], preferred_element_type=jnp.float32)
                     + b).astype(o_ref.dtype)


# --------------------------------------------------------------------------- #
# Streaming pass 1: stats + gram accumulation + Newton-Schulz + affine folding
# --------------------------------------------------------------------------- #
def _stats_newton_kernel(x_ref, w_ref, b_ref, wmat_ref, bvec_ref,
                         s_sum, s_gram, *, T, eps, eps_bn, m_total):
    t = pl.program_id(1)

    @pl.when(t == 0)
    def _init():
        s_sum[...] = jnp.zeros_like(s_sum)
        s_gram[...] = jnp.zeros_like(s_gram)

    x = x_ref[...].astype(jnp.float32)                       # (B, Cg, tL)
    bsz = x.shape[0]

    # lane-partial per-channel sum: only VPU adds in the hot loop; the cross-lane
    # reduce is deferred to the finalize.
    s_sum[...] += jnp.sum(x, axis=0)                          # (Cg, tL)

    # raw gram over batch and L via per-batch NT matmuls (no (B,Cg,Cg) temp,
    # no separate batch reduce, no XLU transpose of the tile).
    g = jnp.einsum('cl,kl->ck', x[0], x[0], preferred_element_type=jnp.float32)
    for bi in range(1, bsz):
        g += jnp.einsum('cl,kl->ck', x[bi], x[bi],
                        preferred_element_type=jnp.float32)
    s_gram[...] += g

    @pl.when(t == pl.num_programs(1) - 1)
    def _finalize():
        mf = jnp.float32(m_total)
        d = s_gram.shape[0]
        eye = jnp.eye(d, dtype=jnp.float32)

        gram = s_gram[...]
        csum = jnp.sum(s_sum[...], axis=1, keepdims=True)             # (Cg, 1)
        mean = csum / mf
        mean_row = jnp.sum(mean * eye, axis=0, keepdims=True)         # (1, Cg)

        # sum-of-squares from the gram diagonal (s_sq accumulator removed)
        sumsq = jnp.sum(gram * eye, axis=1, keepdims=True)            # (Cg, 1)
        # TODO(synk): naive one-pass moments (gram - m*mu*mu^T) can lose precision
        # for very large B*L with strongly non-zero-mean data; a compensated
        # accumulation would fix this. The fused path centers exactly.
        var = (sumsq - mf * mean * mean) / (mf - 1.0)
        std = jnp.sqrt(jnp.maximum(var, 0.0)) + eps_bn
        rstd = 1.0 / std                                              # (Cg, 1)
        rstd_row = jnp.sum(rstd * eye, axis=0, keepdims=True)         # (1, Cg)

        # centered+scaled gram, broadcasted VPU elementwise only
        gram_c = gram - mf * (mean * mean_row)
        gram_cs = gram_c * rstd * rstd_row

        sigma = eye * eps + gram_cs * (1.0 / mf)
        wm = _newton_whiten_matrix(sigma, eye, T)

        # fold mean / 1/std / affine weight / bias into (W', b') so pass 2 is a
        # single matmul + broadcast add:
        #   y = W' x + b',  W' = diag(w) wm diag(rstd),  b' = b - W' mean
        w = w_ref[0]                                                  # (Cg, 1)
        b = b_ref[0]                                                  # (Cg, 1)
        wmat = (wm * rstd_row) * w
        bvec = b - jnp.sum(wmat * mean_row, axis=1, keepdims=True)
        wmat_ref[0] = wmat.astype(wmat_ref.dtype)
        bvec_ref[0] = bvec.astype(bvec_ref.dtype)


# --------------------------------------------------------------------------- #
# Streaming pass 2: y = W' x + b'  (whiten + affine fully folded)
# --------------------------------------------------------------------------- #
def _whiten_affine_kernel(x_ref, wmat_ref, bvec_ref, o_ref):
    wmat = wmat_ref[0]                                        # (Cg, Cg)
    bvec = bvec_ref[0]                                        # (Cg, 1)
    for bi in range(x_ref.shape[0]):
        xb = x_ref[bi].astype(jnp.float32)                    # (Cg, tL)
        o_ref[bi] = (jnp.dot(wmat, xb, preferred_element_type=jnp.float32)
                     + bvec).astype(o_ref.dtype)


# --------------------------------------------------------------------------- #
# Wrapper
# --------------------------------------------------------------------------- #
def coritn_sigma_se(X, weight, bias, *, num_channels=16, T=5, eps=1e-3,
                    eps_bn=1e-5, tile_l=None, force_streaming=False):
    """Training-mode forward of CorItNSigma_SE.

    X: (B, C, L).  weight / bias: broadcastable to (1, C, 1) (affine=True).
    """
    B, C, L = X.shape
    # TODO(synk): ragged last group (C % num_channels != 0) not supported.
    assert C % num_channels == 0, "kernel assumes equal-size channel groups"
    assert num_channels % 8 == 0, "group size must be a multiple of 8 (sublanes)"
    G = C // num_channels
    Cg = num_channels
    M = B * L

    vmem_cap = _vmem_capacity_bytes()
    slab_bytes = B * Cg * L * 4

    w = weight.reshape(1, C, 1).astype(jnp.float32)
    b = bias.reshape(1, C, 1).astype(jnp.float32)

    # ------------------ fused single-pass path (1 read + 1 write) ------------------
    fused_thresh = min(16 << 20, max(2 << 20, (vmem_cap - (16 << 20)) // 8))
    if (not force_streaming) and tile_l is None and slab_bytes <= fused_thresh:
        x_blk = pl.BlockSpec((B, Cg, L), lambda g: (0, g, 0))
        aff_blk = pl.BlockSpec((1, Cg, 1), lambda g: (0, g, 0))
        vmem_fused = int(min(vmem_cap - (4 << 20),
                             max(16 << 20, 8 * slab_bytes + (8 << 20))))
        fused = functools.partial(_fused_kernel, T=T, eps=eps, eps_bn=eps_bn)
        # TODO(synk): for large G on v6e/v7x, packing several groups into a
        # block-diagonal W' would raise MXU utilization beyond 16-wide matmuls.
        return pl.pallas_call(
            fused,
            out_shape=jax.ShapeDtypeStruct((B, C, L), X.dtype),
            grid=(G,),
            in_specs=[x_blk, aff_blk, aff_blk],
            out_specs=x_blk,
            compiler_params=pltpu.CompilerParams(
                dimension_semantics=("parallel",),
                vmem_limit_bytes=vmem_fused),
        )(X, w, b)

    # ------------------ streaming two-pass path ------------------
    Xs, L_eff = X, L
    if L % 128 != 0:
        block_budget = min(8 << 20, vmem_cap // 12)
        if slab_bytes > block_budget:
            # Zero-pad L to a multiple of 128: zeros add nothing to the sums /
            # gram, so stats with the true m = B*L stay exact; padded columns of
            # the output are sliced off at the end.
            L_pad = ((L + 127) // 128) * 128
            Xs = jnp.pad(X, ((0, 0), (0, 0), (0, L_pad - L)))
            L_eff = L_pad

    target_bytes = min(12 << 20, max(2 << 20, vmem_cap // 12))
    if tile_l is None:
        tile_l = _pick_tile_l(B, Cg, L_eff, target_bytes)
    assert L_eff % tile_l == 0 and (tile_l == L_eff or tile_l % 128 == 0)
    n_t = L_eff // tile_l
    block_bytes = B * Cg * tile_l * 4

    x_block = pl.BlockSpec((B, Cg, tile_l), lambda g, t: (0, g, t))
    grp_mat = pl.BlockSpec((1, Cg, Cg), lambda g, t: (g, 0, 0))
    grp_col = pl.BlockSpec((1, Cg, 1), lambda g, t: (g, 0, 0))
    aff_col = pl.BlockSpec((1, Cg, 1), lambda g, t: (0, g, 0))

    # pass 1 streams one operand (2x block double-buffered + lane-partial scratch);
    # pass 2 streams input + output (4x block).
    vmem_p1 = int(min(vmem_cap - (4 << 20),
                      max(16 << 20, 2 * block_bytes + block_bytes // max(B, 1)
                          + (4 << 20))))
    vmem_p2 = int(min(vmem_cap - (4 << 20),
                      max(16 << 20, 4 * block_bytes + (4 << 20))))

    stats_kernel = functools.partial(_stats_newton_kernel, T=T, eps=eps,
                                     eps_bn=eps_bn, m_total=M)
    wmat, bvec = pl.pallas_call(
        stats_kernel,
        out_shape=(jax.ShapeDtypeStruct((G, Cg, Cg), jnp.float32),
                   jax.ShapeDtypeStruct((G, Cg, 1), jnp.float32)),
        grid=(G, n_t),
        in_specs=[x_block, aff_col, aff_col],
        out_specs=(grp_mat, grp_col),
        scratch_shapes=[pltpu.VMEM((Cg, tile_l), jnp.float32),
                        pltpu.VMEM((Cg, Cg), jnp.float32)],
        compiler_params=pltpu.CompilerParams(
            dimension_semantics=("parallel", "arbitrary"),
            vmem_limit_bytes=vmem_p1),
    )(Xs, w, b)

    out = pl.pallas_call(
        _whiten_affine_kernel,
        out_shape=jax.ShapeDtypeStruct((B, C, L_eff), X.dtype),
        grid=(G, n_t),
        in_specs=[x_block, grp_mat, grp_col],
        out_specs=x_block,
        compiler_params=pltpu.CompilerParams(
            dimension_semantics=("parallel", "parallel"),
            vmem_limit_bytes=vmem_p2),
    )(Xs, wmat, bvec)

    if L_eff != L:
        out = out[:, :, :L]
    # TODO(synk): running_mean / running_std / running_projection momentum buffer
    # updates (training-time side effects) are not produced here.
    return out


# --------------------------------------------------------------------------- #
# Pure-JAX reference (mirrors the PyTorch training-mode forward)
# --------------------------------------------------------------------------- #
def _reference(X, weight, bias, *, num_channels=16, T=5, eps=1e-3, eps_bn=1e-5):
    B, C, L = X.shape
    G = C // num_channels
    outs = []
    for g in range(G):
        Xg = X[:, g * num_channels:(g + 1) * num_channels, :]
        x = jnp.transpose(Xg, (1, 0, 2)).reshape(num_channels, -1)
        d, m = x.shape
        mean = jnp.mean(x, axis=-1, keepdims=True)
        xc = x - mean
        std = jnp.sqrt(jnp.sum(xc * xc, axis=-1, keepdims=True) / (m - 1)) + eps_bn
        xcs = xc / std
        eye = jnp.eye(d, dtype=jnp.float32)
        sigma = eye * eps + (xcs @ xcs.T) / m
        trace_inv = 1.0 / jnp.trace(sigma)
        sigma_N = sigma * trace_inv
        P = eye
        for _ in range(T):
            P = 1.5 * P - 0.5 * (P @ P @ P @ sigma_N)
        wm = P * jnp.sqrt(trace_inv)
        xn = wm @ xcs
        outs.append(jnp.transpose(xn.reshape(num_channels, B, L), (1, 0, 2)))
    Xh = jnp.concatenate(outs, axis=1)
    return Xh * weight + bias


if __name__ == "__main__":
    key = jax.random.PRNGKey(0)
    kx, kw, kb = jax.random.split(key, 3)

    B, C, L = 2, 32, 256          # batch=2, num_features=32, seq=256
    num_channels = 16             # -> 2 groups of 16

    X = jax.random.normal(kx, (B, C, L), dtype=jnp.float32)
    weight = 1.0 + 0.1 * jax.random.normal(kw, (1, C, 1), dtype=jnp.float32)
    bias = 0.1 * jax.random.normal(kb, (1, C, 1), dtype=jnp.float32)

    ref = _reference(X, weight, bias, num_channels=num_channels, T=5)

    # fused single-pass path (default for small group slabs)
    out_fused = jax.block_until_ready(
        coritn_sigma_se(X, weight, bias, num_channels=num_channels, T=5))
    # streaming two-pass path (tile_l=128 -> 2 L-tiles per group reduction)
    out_stream = jax.block_until_ready(
        coritn_sigma_se(X, weight, bias, num_channels=num_channels, T=5,
                        tile_l=128))

    for out in (out_fused, out_stream):
        assert out.shape == X.shape
        err = float(jnp.max(jnp.abs(out - ref)))
        assert err < 1e-3, f"mismatch vs pure-JAX reference: max abs err {err}"

    print("KERNEL_OK")
</pallas_src>

<mosaic_0001>
module attributes {stable_mosaic.version = 11 : i64} {
  func.func @_fused_kernel(%arg0: i32, %arg1: memref<2x16x256xf32, #tpu.memory_space<vmem>>, %arg2: memref<1x16x1xf32, #tpu.memory_space<vmem>>, %arg3: memref<1x16x1xf32, #tpu.memory_space<vmem>>, %arg4: memref<2x16x256xf32, #tpu.memory_space<vmem>>) attributes {dimension_semantics = [#tpu.dimension_semantics<parallel>], iteration_bounds = array<i64: 2>, scalar_prefetch = 0 : i64, scratch_operands = 0 : i64, tpu.core_type = #tpu.core_type<tc>, window_params = [{transform_indices = @transform_0, window_bounds = array<i64: 2, 16, 256>}, {transform_indices = @transform_1, window_bounds = array<i64: 1, 16, 1>}, {transform_indices = @transform_2, window_bounds = array<i64: 1, 16, 1>}, {transform_indices = @transform_3, window_bounds = array<i64: 2, 16, 256>}]} {
    %c0 = arith.constant 0 : index
    %c0_0 = arith.constant 0 : index
    %c0_1 = arith.constant 0 : index
    %0 = vector.load %arg1[%c0, %c0_0, %c0_1] : memref<2x16x256xf32, #tpu.memory_space<vmem>>, vector<2x16x256xf32>
    %1 = tpu.iota {dimensions = array<i32: 0>} : vector<16x16xi32>
    %2 = tpu.iota {dimensions = array<i32: 1>} : vector<16x16xi32>
    %c0_i32 = arith.constant 0 : i32
    %3 = vector.broadcast %c0_i32 : i32 to vector<16x16xi32>
    %4 = arith.addi %1, %3 : vector<16x16xi32>
    %5 = arith.cmpi eq, %4, %2 : vector<16x16xi32>
    %6 = arith.extui %5 : vector<16x16xi1> to vector<16x16xi32>
    %7 = arith.sitofp %6 : vector<16x16xi32> to vector<16x16xf32>
    %cst = arith.constant dense<0.000000e+00> : vector<16x256xf32>
    %8 = vector.multi_reduction <add>, %0, %cst [0] : vector<2x16x256xf32> to vector<16x256xf32>
    %cst_2 = arith.constant dense<0.000000e+00> : vector<16xf32>
    %9 = vector.multi_reduction <add>, %8, %cst_2 [1] : vector<16x256xf32> to vector<16xf32>
    %10 = vector.shape_cast %9 : vector<16xf32> to vector<16x1xf32>
    %cst_3 = arith.constant 5.120000e+02 : f32
    %11 = vector.broadcast %cst_3 : f32 to vector<16x1xf32>
    %12 = arith.divf %10, %11 : vector<16x1xf32>
    %13 = vector.shape_cast %12 : vector<16x1xf32> to vector<1x16x1xf32>
    %14 = vector.broadcast %13 : vector<1x16x1xf32> to vector<2x16x256xf32>
    %15 = arith.subf %0, %14 : vector<2x16x256xf32>
    %16 = vector.extract_strided_slice %15 {offsets = [0, 0, 0], sizes = [1, 16, 256], strides = [1, 1, 1]} : vector<2x16x256xf32> to vector<1x16x256xf32>
    %17 = vector.shape_cast %16 : vector<1x16x256xf32> to vector<16x256xf32>
    %18 = vector.extract_strided_slice %15 {offsets = [0, 0, 0], sizes = [1, 16, 256], strides = [1, 1, 1]} : vector<2x16x256xf32> to vector<1x16x256xf32>
    %19 = vector.shape_cast %18 : vector<1x16x256xf32> to vector<16x256xf32>
    "tpu.trace_start"() <{level = 10 : i32, message = "cl,kl->ck"}> : () -> ()
    %cst_4 = arith.constant dense<0.000000e+00> : vector<16x16xf32>
    %20 = tpu.matmul %17, %19, %cst_4 {dimension_numbers = #tpu.dot_dimension_numbers<[1], [1], [0], [0], [0, 0, 1, 0], [], []>} : vector<16x256xf32>, vector<16x256xf32>, vector<16x16xf32> -> vector<16x16xf32>
    "tpu.trace_stop"() : () -> ()
    %21 = vector.extract_strided_slice %15 {offsets = [1, 0, 0], sizes = [1, 16, 256], strides = [1, 1, 1]} : vector<2x16x256xf32> to vector<1x16x256xf32>
    %22 = vector.shape_cast %21 : vector<1x16x256xf32> to vector<16x256xf32>
    %23 = vector.extract_strided_slice %15 {offsets = [1, 0, 0], sizes = [1, 16, 256], strides = [1, 1, 1]} : vector<2x16x256xf32> to vector<1x16x256xf32>
    %24 = vector.shape_cast %23 : vector<1x16x256xf32> to vector<16x256xf32>
    "tpu.trace_start"() <{level = 10 : i32, message = "cl,kl->ck"}> : () -> ()
    %cst_5 = arith.constant dense<0.000000e+00> : vector<16x16xf32>
    %25 = tpu.matmul %22, %24, %cst_5 {dimension_numbers = #tpu.dot_dimension_numbers<[1], [1], [0], [0], [0, 0, 1, 0], [], []>} : vector<16x256xf32>, vector<16x256xf32>, vector<16x16xf32> -> vector<16x16xf32>
    "tpu.trace_stop"() : () -> ()
    %26 = arith.addf %20, %25 : vector<16x16xf32>
    %27 = arith.mulf %26, %7 : vector<16x16xf32>
    %cst_6 = arith.constant dense<0.000000e+00> : vector<16xf32>
    %28 = vector.multi_reduction <add>, %27, %cst_6 [1] : vector<16x16xf32> to vector<16xf32>
    %29 = vector.shape_cast %28 : vector<16xf32> to vector<16x1xf32>
    %cst_7 = arith.constant 5.120000e+02 : f32
    %cst_8 = arith.constant 1.000000e+00 : f32
    %30 = arith.subf %cst_7, %cst_8 : f32
    %31 = vector.broadcast %30 : f32 to vector<16x1xf32>
    %32 = arith.divf %29, %31 : vector<16x1xf32>
    %33 = math.sqrt %32 : vector<16x1xf32>
    %cst_9 = arith.constant 9.99999974E-6 : f32
    %34 = vector.broadcast %cst_9 : f32 to vector<16x1xf32>
    %35 = arith.addf %33, %34 : vector<16x1xf32>
    %cst_10 = arith.constant 1.000000e+00 : f32
    %36 = vector.broadcast %cst_10 : f32 to vector<16x1xf32>
    %37 = arith.divf %36, %35 : vector<16x1xf32>
    %38 = vector.broadcast %37 : vector<16x1xf32> to vector<16x16xf32>
    %39 = arith.mulf %38, %7 : vector<16x16xf32>
    %cst_11 = arith.constant dense<0.000000e+00> : vector<16xf32>
    %40 = vector.multi_reduction <add>, %39, %cst_11 [0] : vector<16x16xf32> to vector<16xf32>
    %41 = vector.shape_cast %40 : vector<16xf32> to vector<1x16xf32>
    %42 = vector.broadcast %37 : vector<16x1xf32> to vector<16x16xf32>
    %43 = arith.mulf %26, %42 : vector<16x16xf32>
    %44 = vector.broadcast %41 : vector<1x16xf32> to vector<16x16xf32>
    %45 = arith.mulf %43, %44 : vector<16x16xf32>
    %cst_12 = arith.constant 1.000000e-03 : f32
    %46 = vector.broadcast %cst_12 : f32 to vector<16x16xf32>
    %47 = arith.mulf %7, %46 : vector<16x16xf32>
    %cst_13 = arith.constant 1.000000e+00 : f32
    %cst_14 = arith.constant 5.120000e+02 : f32
    %48 = arith.divf %cst_13, %cst_14 : f32
    %49 = vector.broadcast %48 : f32 to vector<16x16xf32>
    %50 = arith.mulf %45, %49 : vector<16x16xf32>
    %51 = arith.addf %47, %50 : vector<16x16xf32>
    %52 = arith.mulf %51, %7 : vector<16x16xf32>
    %53 = vector.shape_cast %52 : vector<16x16xf32> to vector<1x16x16xf32>
    %cst_15 = arith.constant dense<0.000000e+00> : vector<1xf32>
    %54 = vector.multi_reduction <add>, %53, %cst_15 [1, 2] : vector<1x16x16xf32> to vector<1xf32>
    %55 = vector.shape_cast %54 : vector<1xf32> to vector<1x1x1xf32>
    %56 = vector.extract %55[0, 0, 0] : f32 from vector<1x1x1xf32>
    %cst_16 = arith.constant 1.000000e+00 : f32
    %57 = arith.divf %cst_16, %56 : f32
    %58 = vector.broadcast %57 : f32 to vector<16x16xf32>
    %59 = arith.mulf %51, %58 : vector<16x16xf32>
    %cst_17 = arith.constant dense<0.000000e+00> : vector<16x16xf32>
    %60 = tpu.matmul %7, %7, %cst_17 {dimension_numbers = #tpu.dot_dimension_numbers<[1], [0], [0], [1], [0, 0, 1, 1], [], []>} : vector<16x16xf32>, vector<16x16xf32>, vector<16x16xf32> -> vector<16x16xf32>
    %cst_18 = arith.constant dense<0.000000e+00> : vector<16x16xf32>
    %61 = tpu.matmul %60, %7, %cst_18 {dimension_numbers = #tpu.dot_dimension_numbers<[1], [0], [0], [1], [0, 0, 1, 1], [], []>} : vector<16x16xf32>, vector<16x16xf32>, vector<16x16xf32> -> vector<16x16xf32>
    %cst_19 = arith.constant 1.500000e+00 : f32
    %62 = vector.broadcast %cst_19 : f32 to vector<16x16xf32>
    %63 = arith.mulf %62, %7 : vector<16x16xf32>
    %cst_20 = arith.constant dense<0.000000e+00> : vector<16x16xf32>
    %64 = tpu.matmul %61, %59, %cst_20 {dimension_numbers = #tpu.dot_dimension_numbers<[1], [0], [0], [1], [0, 0, 1, 1], [], []>} : vector<16x16xf32>, vector<16x16xf32>, vector<16x16xf32> -> vector<16x16xf32>
    %cst_21 = arith.constant 5.000000e-01 : f32
    %65 = vector.broadcast %cst_21 : f32 to vector<16x16xf32>
    %66 = arith.mulf %65, %64 : vector<16x16xf32>
    %67 = arith.subf %63, %66 : vector<16x16xf32>
    %cst_22 = arith.constant dense<0.000000e+00> : vector<16x16xf32>
    %68 = tpu.matmul %67, %67, %cst_22 {dimension_numbers = #tpu.dot_dimension_numbers<[1], [0], [0], [1], [0, 0, 1, 1], [], []>} : vector<16x16xf32>, vector<16x16xf32>, vector<16x16xf32> -> vector<16x16xf32>
    %cst_23 = arith.constant dense<0.000000e+00> : vector<16x16xf32>
    %69 = tpu.matmul %68, %67, %cst_23 {dimension_numbers = #tpu.dot_dimension_numbers<[1], [0], [0], [1], [0, 0, 1, 1], [], []>} : vector<16x16xf32>, vector<16x16xf32>, vector<16x16xf32> -> vector<16x16xf32>
    %cst_24 = arith.constant 1.500000e+00 : f32
    %70 = vector.broadcast %cst_24 : f32 to vector<16x16xf32>
    %71 = arith.mulf %70, %67 : vector<16x16xf32>
    %cst_25 = arith.constant dense<0.000000e+00> : vector<16x16xf32>
    %72 = tpu.matmul %69, %59, %cst_25 {dimension_numbers = #tpu.dot_dimension_numbers<[1], [0], [0], [1], [0, 0, 1, 1], [], []>} : vector<16x16xf32>, vector<16x16xf32>, vector<16x16xf32> -> vector<16x16xf32>
    %cst_26 = arith.constant 5.000000e-01 : f32
    %73 = vector.broadcast %cst_26 : f32 to vector<16x16xf32>
    %74 = arith.mulf %73, %72 : vector<16x16xf32>
    %75 = arith.subf %71, %74 : vector<16x16xf32>
    %cst_27 = arith.constant dense<0.000000e+00> : vector<16x16xf32>
    %76 = tpu.matmul %75, %75, %cst_27 {dimension_numbers = #tpu.dot_dimension_numbers<[1], [0], [0], [1], [0, 0, 1, 1], [], []>} : vector<16x16xf32>, vector<16x16xf32>, vector<16x16xf32> -> vector<16x16xf32>
    %cst_28 = arith.constant dense<0.000000e+00> : vector<16x16xf32>
    %77 = tpu.matmul %76, %75, %cst_28 {dimension_numbers = #tpu.dot_dimension_numbers<[1], [0], [0], [1], [0, 0, 1, 1], [], []>} : vector<16x16xf32>, vector<16x16xf32>, vector<16x16xf32> -> vector<16x16xf32>
    %cst_29 = arith.constant 1.500000e+00 : f32
    %78 = vector.broadcast %cst_29 : f32 to vector<16x16xf32>
    %79 = arith.mulf %78, %75 : vector<16x16xf32>
    %cst_30 = arith.constant dense<0.000000e+00> : vector<16x16xf32>
    %80 = tpu.matmul %77, %59, %cst_30 {dimension_numbers = #tpu.dot_dimension_numbers<[1], [0], [0], [1], [0, 0, 1, 1], [], []>} : vector<16x16xf32>, vector<16x16xf32>, vector<16x16xf32> -> vector<16x16xf32>
    %cst_31 = arith.constant 5.000000e-01 : f32
    %81 = vector.broadcast %cst_31 : f32 to vector<16x16xf32>
    %82 = arith.mulf %81, %80 : vector<16x16xf32>
    %83 = arith.subf %79, %82 : vector<16x16xf32>
    %cst_32 = arith.constant dense<0.000000e+00> : vector<16x16xf32>
    %84 = tpu.matmul %83, %83, %cst_32 {dimension_numbers = #tpu.dot_dimension_numbers<[1], [0], [0], [1], [0, 0, 1, 1], [], []>} : vector<16x16xf32>, vector<16x16xf32>, vector<16x16xf32> -> vector<16x16xf32>
    %cst_33 = arith.constant dense<0.000000e+00> : vector<16x16xf32>
    %85 = tpu.matmul %84, %83, %cst_33 {dimension_numbers = #tpu.dot_dimension_numbers<[1], [0], [0], [1], [0, 0, 1, 1], [], []>} : vector<16x16xf32>, vector<16x16xf32>, vector<16x16xf32> -> vector<16x16xf32>
    %cst_34 = arith.constant 1.500000e+00 : f32
    %86 = vector.broadcast %cst_34 : f32 to vector<16x16xf32>
    %87 = arith.mulf %86, %83 : vector<16x16xf32>
    %cst_35 = arith.constant dense<0.000000e+00> : vector<16x16xf32>
    %88 = tpu.matmul %85, %59, %cst_35 {dimension_numbers = #tpu.dot_dimension_numbers<[1], [0], [0], [1], [0, 0, 1, 1], [], []>} : vector<16x16xf32>, vector<16x16xf32>, vector<16x16xf32> -> vector<16x16xf32>
    %cst_36 = arith.constant 5.000000e-01 : f32
    %89 = vector.broadcast %cst_36 : f32 to vector<16x16xf32>
    %90 = arith.mulf %89, %88 : vector<16x16xf32>
    %91 = arith.subf %87, %90 : vector<16x16xf32>
    %cst_37 = arith.constant dense<0.000000e+00> : vector<16x16xf32>
    %92 = tpu.matmul %91, %91, %cst_37 {dimension_numbers = #tpu.dot_dimension_numbers<[1], [0], [0], [1], [0, 0, 1, 1], [], []>} : vector<16x16xf32>, vector<16x16xf32>, vector<16x16xf32> -> vector<16x16xf32>
    %cst_38 = arith.constant dense<0.000000e+00> : vector<16x16xf32>
    %93 = tpu.matmul %92, %91, %cst_38 {dimension_numbers = #tpu.dot_dimension_numbers<[1], [0], [0], [1], [0, 0, 1, 1], [], []>} : vector<16x16xf32>, vector<16x16xf32>, vector<16x16xf32> -> vector<16x16xf32>
    %cst_39 = arith.constant 1.500000e+00 : f32
    %94 = vector.broadcast %cst_39 : f32 to vector<16x16xf32>
    %95 = arith.mulf %94, %91 : vector<16x16xf32>
    %cst_40 = arith.constant dense<0.000000e+00> : vector<16x16xf32>
    %96 = tpu.matmul %93, %59, %cst_40 {dimension_numbers = #tpu.dot_dimension_numbers<[1], [0], [0], [1], [0, 0, 1, 1], [], []>} : vector<16x16xf32>, vector<16x16xf32>, vector<16x16xf32> -> vector<16x16xf32>
    %cst_41 = arith.constant 5.000000e-01 : f32
    %97 = vector.broadcast %cst_41 : f32 to vector<16x16xf32>
    %98 = arith.mulf %97, %96 : vector<16x16xf32>
    %99 = arith.subf %95, %98 : vector<16x16xf32>
    %100 = math.sqrt %57 : f32
    %101 = vector.broadcast %100 : f32 to vector<16x16xf32>
    %102 = arith.mulf %99, %101 : vector<16x16xf32>
    %c0_42 = arith.constant 0 : index
    %c0_43 = arith.constant 0 : index
    %c0_44 = arith.constant 0 : index
    %103 = vector.load %arg2[%c0_42, %c0_43, %c0_44] : memref<1x16x1xf32, #tpu.memory_space<vmem>>, vector<1x16x1xf32>
    %104 = vector.shape_cast %103 : vector<1x16x1xf32> to vector<16x1xf32>
    %c0_45 = arith.constant 0 : index
    %c0_46 = arith.constant 0 : index
    %c0_47 = arith.constant 0 : index
    %105 = vector.load %arg3[%c0_45, %c0_46, %c0_47] : memref<1x16x1xf32, #tpu.memory_space<vmem>>, vector<1x16x1xf32>
    %106 = vector.shape_cast %105 : vector<1x16x1xf32> to vector<16x1xf32>
    %107 = vector.broadcast %41 : vector<1x16xf32> to vector<16x16xf32>
    %108 = arith.mulf %102, %107 : vector<16x16xf32>
    %109 = vector.broadcast %104 : vector<16x1xf32> to vector<16x16xf32>
    %110 = arith.mulf %108, %109 : vector<16x16xf32>
    %111 = vector.extract_strided_slice %15 {offsets = [0, 0, 0], sizes = [1, 16, 256], strides = [1, 1, 1]} : vector<2x16x256xf32> to vector<1x16x256xf32>
    %112 = vector.shape_cast %111 : vector<1x16x256xf32> to vector<16x256xf32>
    %cst_48 = arith.constant dense<0.000000e+00> : vector<16x256xf32>
    %113 = tpu.matmul %110, %112, %cst_48 {dimension_numbers = #tpu.dot_dimension_numbers<[1], [0], [0], [1], [0, 0, 1, 1], [], []>} : vector<16x16xf32>, vector<16x256xf32>, vector<16x256xf32> -> vector<16x256xf32>
    %114 = vector.broadcast %106 : vector<16x1xf32> to vector<16x256xf32>
    %115 = arith.addf %113, %114 : vector<16x256xf32>
    %c0_49 = arith.constant 0 : index
    %c0_50 = arith.constant 0 : index
    %c0_51 = arith.constant 0 : index
    %116 = vector.load %arg4[%c0_49, %c0_50, %c0_51] : memref<2x16x256xf32, #tpu.memory_space<vmem>>, vector<1x16x256xf32>
    %117 = vector.shape_cast %116 : vector<1x16x256xf32> to vector<16x256xf32>
    %118 = vector.shape_cast %115 : vector<16x256xf32> to vector<1x16x256xf32>
    tpu.vector_store %arg4[%c0_49, %c0_50, %c0_51], %118 {strides = array<i32>} : memref<2x16x256xf32, #tpu.memory_space<vmem>>, vector<1x16x256xf32>,
    %119 = vector.extract_strided_slice %15 {offsets = [1, 0, 0], sizes = [1, 16, 256], strides = [1, 1, 1]} : vector<2x16x256xf32> to vector<1x16x256xf32>
    %120 = vector.shape_cast %119 : vector<1x16x256xf32> to vector<16x256xf32>
    %cst_52 = arith.constant dense<0.000000e+00> : vector<16x256xf32>
    %121 = tpu.matmul %110, %120, %cst_52 {dimension_numbers = #tpu.dot_dimension_numbers<[1], [0], [0], [1], [0, 0, 1, 1], [], []>} : vector<16x16xf32>, vector<16x256xf32>, vector<16x256xf32> -> vector<16x256xf32>
    %122 = vector.broadcast %106 : vector<16x1xf32> to vector<16x256xf32>
    %123 = arith.addf %121, %122 : vector<16x256xf32>
    %c1 = arith.constant 1 : index
    %c0_53 = arith.constant 0 : index
    %c0_54 = arith.constant 0 : index
    %124 = vector.load %arg4[%c1, %c0_53, %c0_54] : memref<2x16x256xf32, #tpu.memory_space<vmem>>, vector<1x16x256xf32>
    %125 = vector.shape_cast %124 : vector<1x16x256xf32> to vector<16x256xf32>
    %126 = vector.shape_cast %123 : vector<16x256xf32> to vector<1x16x256xf32>
    tpu.vector_store %arg4[%c1, %c0_53, %c0_54], %126 {strides = array<i32>} : memref<2x16x256xf32, #tpu.memory_space<vmem>>, vector<1x16x256xf32>,
    return
  }
  func.func @transform_0(%arg0: i32) -> (i32, i32, i32) {
    %c0_i32 = arith.constant 0 : i32
    %c0_i32_0 = arith.constant 0 : i32
    %c0_i32_1 = arith.constant 0 : i32
    return %c0_i32, %arg0, %c0_i32_0 : i32, i32, i32
  }
  func.func @transform_1(%arg0: i32) -> (i32, i32, i32) {
    %c0_i32 = arith.constant 0 : i32
    %c0_i32_0 = arith.constant 0 : i32
    %c0_i32_1 = arith.constant 0 : i32
    return %c0_i32, %arg0, %c0_i32_0 : i32, i32, i32
  }
  func.func @transform_2(%arg0: i32) -> (i32, i32, i32) {
    %c0_i32 = arith.constant 0 : i32
    %c0_i32_0 = arith.constant 0 : i32
    %c0_i32_1 = arith.constant 0 : i32
    return %c0_i32, %arg0, %c0_i32_0 : i32, i32, i32
  }
  func.func @transform_3(%arg0: i32) -> (i32, i32, i32) {
    %c0_i32 = arith.constant 0 : i32
    %c0_i32_0 = arith.constant 0 : i32
    %c0_i32_1 = arith.constant 0 : i32
    return %c0_i32, %arg0, %c0_i32_0 : i32, i32, i32
  }
}

</mosaic_0001>

<bundles_post_ra>
// kernel: tpu_custom_call.1
= control target key start
LH: loop header
LB: loop body
LE: loop exit
PB: predicated region body
PF: predicated region fallthrough
CT: control target
= control target key end

     0   :  { %8 = vsyncpa [#allocation3], 0  ;;  %s1809_s0 = inlined_call_operand.hbm [shape: f32[2,32,256], index: 0, kind: input, shape index: {}]   ;;  %s1810_s1 = inlined_call_operand.vmem [shape: f32[1,32,1], index: 1, kind: input, shape index: {}]   ;;  %s1811_s2 = inlined_call_operand.vmem [shape: f32[1,32,1], index: 2, kind: input, shape index: {}]   ;;  %s1812_s3 = inlined_call_operand.hbm [shape: f32[2,32,256], index: 3, kind: output, shape index: {}]  }
   0x1   :  { %10 = vsyncpa [#allocation3 + $0x1], 0 }
   0x2   :  { %11 = vsyncpa [#allocation4], 0 }
   0x3   :  { %13 = vsyncpa [#allocation4 + $0x1], 0  ;;  %s1534_s12 = smov 0   ;;  %s1536_s13 = smov 0  }
   0x4   :  { %s1538_s14 = smov 0   ;;  %s1540_s15 = smov 0  }
   0x5 LB: > { %s1555_s16 = sadd.s32 4294967295, %s1494_s15   ;;  %s1283_s17 = sadd.s32 4294967294, %s1494_s15   ;;  %s1494_s15 = sphi %s1540_s15, %s1820_s15   ;;  %s1490_s14 = sphi %s1538_s14, %s1819_s14   ;;  %s1486_s13 = sphi %s1536_s13, %s1818_s13   ;;  %s1482_s12 = sphi %s1534_s12, %s1817_s12  }
   0x6   : > { %s1559_s18 = sadd.s32 1, %s1494_s15   ;;  %s26_s19 = sadd.s32 1, %s1490_s14 }
   0x7   : > { %s23_s20 = ssub.s32 %s1494_s15, %s1559_s18  ;;  %p33_p0 = scmp.ne.s32.totalorder %s1490_s14, %s1486_s13 }
   0x8   : > { %p24_p1 = scmp.eq.s32.totalorder %s23_s20, 0  ;;  %p34_p2 = scmp.eq.s32.totalorder %s1494_s15, 0 }
   0x9   : > { %p39_p3 = scmp.ne.s32.totalorder %s1486_s13, %s1482_s12  ;;  %p40_p4 = scmp.eq.s32.totalorder %s1555_s16, 0 }
   0xa   : > { %s1571_s21 = scalar_select %p24_p1, %s1490_s14, %s26_s19  }
   0xb   : > { %p1573_p5 = por %p34_p2, %p33_p0  ;;  %p1577_p6 = por %p40_p4, %p39_p3 }
   0xc   : > { %p115_p7 = scmp.eq.s32.totalorder %s1555_s16, 1  ;;  %p121_p8 = scmp.eq.s32.totalorder %s1283_s17, 1 }
   0xd   : > { %p1285_p11 = scmp.ge.s32.totalorder %s1494_s15, 2 }
   0xe   : > { %p1582_p9 = por %p115_p7, %p33_p0  ;;  %p1586_p10 = por %p121_p8, %p39_p3 }
   0xf   : > { %137 = sbr.rel (%p1285_p11) target bundleno = 34 (0x22), region = 16 }
  0x14   : > { %s141_s26 = sand.u32 1, %s1490_s14   ;;  %s1354_s27 = sshll.u32 %s1494_s15, 5 }
  0x15   : > { %s1286_s28 = sshll.u32 %s141_s26, 6  ;;  %s151_s4 = scalar_lea.hbm %s1809_s0, %s1354_s27 }
  0x16   : > { %s1365_s5 = scalar_select %p1573_p5, [#allocation0], [#allocation10] }
  0x17   : > { %s164_s6 = sshll.u32 %s151_s4, 4  ;;  %s145_s7 = scalar_lea.vmem [#allocation2], %s1286_s28  ;;  %s165_s6 = int_to_ptr.hbm [resolvable:$true] %s164_s6 }
  0x18   : > { %s166_s8 = sshll.u32 %s145_s7, 4  ;;  %s156_s9 = sld [smem:[%s1365_s5]]   ;;  %s167_s8 = int_to_ptr.vmem [resolvable:$true] %s166_s8 }
  0x19   : > { %s1496_s10 = smov 1024   ;;  %s1497_s11 = smov 512  }
  0x1a   : > { %1366 = sst [smem:[#allocation7]] (%p1573_p5), %s1496_s10  ;;  %s1498_s17 = smov 2  }
  0x1b   : > { %1367 = sst [smem:[#allocation7 + $0x1]] (%p1573_p5), %s1497_s11  ;;  %s1499_s19 = smov 256  }
  0x1c   : > { %1368 = sst [smem:[#allocation7 + $0x2]] (%p1573_p5), %s1498_s17  ;;  %s1500_s28 = smov 16  }
  0x1d   : > { %1369 = sst [smem:[#allocation7 + $0x3]] (%p1573_p5), %s1499_s19  ;;  %s142_s29 = scalar_lea.sflag [#allocation3], %s141_s26 }
  0x1e   : > { %s1290_s20 = sshll.u32 %s156_s9, 26  ;;  %1370 = sst [smem:[#allocation7 + $0x4]] (%p1573_p5), %s1499_s19 }
  0x1f   : > { %s1291_s27 = sadd.s32 134217728, %s1290_s20  ;;  %1371 = sst [smem:[#allocation7 + $0x5]] (%p1573_p5), %s1500_s28 }
  0x20   : > { %s1501_s30 = smov [#allocation6]  }
  0x21   : > { %1372 = dma.general (%p1573_p5), %s165_s6, 1024, %s167_s8, %s142_s29, %s1501_s30, [#allocation7], %s1291_s27, 0  }
  0x22 PF: > { %p1292_p12 = scmp.ge.s32.totalorder %s1494_s15, 1  ;;  %p205_p13 = scmp.lt.s32.totalorder %s1494_s15, 3 }
  0x24   : > { %p206_p0 = pnand %p1292_p12, %p205_p13 }
  0x25   : > { %s1617_s4 = sand.u32 (!%p206_p0), 1, %s1486_s13  }
  0x26   : > { %209 = sbr.rel (%p206_p0) target bundleno = 2676 (0xa74), region = 32  ;;  %s1293_s5 = sshll.u32 (!%p206_p0), %s1617_s4, 6 }
  0x27   : > { %s212_s7 = scalar_lea.sflag (!%p206_p0), [#allocation3], %s1617_s4  ;;  %s215_s26 = scalar_lea.vmem (!%p206_p0), [#allocation2], %s1293_s5 }
  0x2b   : > { %1473 = dma.done.wait (%p1577_p6), %s212_s7, 1024  }
  0x2c   : > { %1475 = vsyncadd (%p1577_p6), %s212_s7, 4294966272  ;;  %v265_v0 = vld [vmem:[%s215_s26 + $0x10] sm:$0xff]  ;;  %v266_v1 = vld [vmem:[%s215_s26 + $0x18] sm:$0xff]  ;;  %v1502_v14 = vmov 512.0   ;;  %v271_v33 = vlaneseq  ;;  %v1503_v43 = vmov 0.0   ;;  %vm403_vm2 = vcmask 130048  }
  0x2d   : > { %v269_v2 = vld [vmem:[%s215_s26 + $0x30] sm:$0xff]  ;;  %v270_v3 = vld [vmem:[%s215_s26 + $0x38] sm:$0xff]  ;;  %v263_v6 = vld [vmem:[%s215_s26] sm:$0xff]  ;;  %1440 = vrcp.f32 %v1502_v14  ;;  %v1504_v58 = vmov 511.0   ;;  %s1295_s6 = sshll.u32 %s1555_s16, 1  ;;  %s248_s28 = scalar_lea.vmem [#allocation5], %s1293_s5 }
  0x2e   : > { %v284_v4 = vadd.f32 %v269_v2, %v265_v0  ;;  %v285_v5 = vadd.f32 %v270_v3, %v266_v1  ;;  %v264_v7 = vld [vmem:[%s215_s26 + $0x8] sm:$0xff]  ;;  %v267_v8 = vld [vmem:[%s215_s26 + $0x20] sm:$0xff]  ;;  %v272_v36 = vshrl.u32 %v271_v33, 7  ;;  %v275_v37 = vand.u32 127, %v271_v33  ;;  %p251_p1 = scmp.lt.s32.totalorder %s1295_s6, 3  ;;  %s1147_s29 = scalar_lea.sflag [#allocation4], %s1617_s4 }
  0x2f   : > { %v268_v9 = vld [vmem:[%s215_s26 + $0x28] sm:$0xff]  ;;  %v282_v11 = vadd.f32 %v267_v8, %v263_v6  ;;  %1442 = vrcp.f32 %v1504_v58 }
  0x30   : > { %v289_v10 = vadd.f32 %v285_v5, %v284_v4  ;;  %v283_v12 = vadd.f32 %v268_v9, %v264_v7  ;;  %vm276_vm1 = vcmp.eq.s32.totalorder %v272_v36, %v275_v37  ;;  %v273_v46 = vadd.s32 8, %v272_v36  ;;  %s1822_s6 = smov (!%p251_p1, %s1295_s6), 3 }
  0x31   : > { %v1662_v44 = vsel %vm276_vm1, 1.0, %v1503_v43  ;;  %s1296_s8 = sshll.u32 %s1822_s6, 3 }
  0x32   : > { %290 = vadd.xlane.f32.xlu0 %v289_v10  ;;  %v286_v13 = vadd.f32 %v283_v12, %v282_v11  ;;  %vm277_vm3 = vcmp.eq.s32.totalorder %v273_v46, %v275_v37  ;;  %s254_s11 = scalar_lea.vmem %s1810_s1, %s1296_s8  ;;  %s260_s20 = scalar_lea.vmem %s1811_s2, %s1296_s8 }
  0x33   : > { %v1441_v15 = vpop.eup %1440  ;;  %v1670_v54 = vsel %vm277_vm3, 1.0, %v1503_v43 }
  0x34   : > { %v293_v16 = vmul.f32 512.0, %v1441_v15  ;;  %vm297_vm0 = vweird.f32 %v1441_v15 }
  0x35   : > { %v1443_v59 = vpop.eup %1442 }
  0x36   : > { %v294_v17 = vsub.f32 1.0, %v293_v16  ;;  %v411_v60 = vmul.f32 511.0, %v1443_v59  ;;  %vm415_vm4 = vweird.f32 %v1443_v59 }
  0x38   : > { %v295_v18 = vmul.f32 %v1441_v15, %v294_v17  ;;  %v412_v61 = vsub.f32 1.0, %v411_v60 }
  0x3a   : > { %287 = vadd.xlane.f32.xlu0 %v286_v13  ;;  %v296_v19 = vadd.f32 %v1441_v15, %v295_v18  ;;  %v413_v62 = vmul.f32 %v1443_v59, %v412_v61 }
  0x3c   : > { %v298_v20 = vsel %vm297_vm0, %v1441_v15, %v296_v19  ;;  %v414_v63 = vadd.f32 %v1443_v59, %v413_v62 }
  0xa5   : > { %v291_v21 = vpop.xlane.xlu0 %290 }
  0xa6   : > { %v300_v22 = vmul.f32 %v298_v20, %v291_v21 }
  0xa8   : > { %v1627_v23 = vsub.f32 %v269_v2, %v300_v22  ;;  %v1629_v24 = vsub.f32 %v270_v3, %v300_v22  ;;  %v1631_v25 = vsub.f32 %v265_v0, %v300_v22  ;;  %v1645_v31 = vsub.f32 %v266_v1, %v300_v22 }
  0xa9   : > { %v416_v0 = vsel %vm415_vm4, %v1443_v59, %v414_v63  ;;  %v1505_v1 = vmov 1.0  }
  0xaa   : > { %323 = vmatpush.xpose.msra.mxu0 %v1627_v23  ;;  %1357 = vmatpush.xpose.msra.mxu3 %v1627_v23 }
  0xab   : > { %346 = vmatpush.xpose.msra.mxu1 %v1629_v24  ;;  %369 = vmatpush.xpose.msra.mxu2 %v1631_v25 }
  0xad   : > { %v288_v26 = vpop.xlane.xlu0 %287 }
  0xae   : > { %v299_v27 = vmul.f32 %v298_v20, %v288_v26 }
  0xb0   : > { %v1637_v28 = vsub.f32 %v267_v8, %v299_v27  ;;  %v1639_v29 = vsub.f32 %v268_v9, %v299_v27  ;;  %v1641_v30 = vsub.f32 %v263_v6, %v299_v27  ;;  %v1654_v32 = vsub.f32 %v264_v7, %v299_v27 }
  0xb2   : > { %324 = vmatpush.xpose.msra.mxu0 %v1637_v28  ;;  %1358 = vmatpush.xpose.msra.mxu3 %v1637_v28 }
  0xb3   : > { %347 = vmatpush.xpose.msra.mxu1 %v1639_v29  ;;  %370 = vmatpush.xpose.msra.mxu2 %v1641_v30 }
  0xb5   : > { %325 = vmatmul.f32.vlgmr.msra.gmra.mxu0 %v1637_v28  ;;  %328 = vmatmul.f32.vlgmr.msra.gmra.mxu3 %v1627_v23 }
  0xb6   : > { %392 = vmatpush.xpose.msrb.mxu3 %v1645_v31  ;;  %348 = vmatmul.f32.vlgmr.msra.gmra.mxu1 %v1639_v29 }
  0xb7   : > { %371 = vmatmul.f32.vlgmr.msra.gmra.mxu2 %v1641_v30  ;;  %1301 = vmatpush.msk.msrb.mxu0 %vm277_vm3, %v1505_v1 }
  0xb8   : > { %1305 = vmatpush.msk.msrb.mxu1 %vm277_vm3, %v1505_v1 }
  0xb9   : > { %1302 = vmatpush.msk.msrb.mxu0 %vm276_vm1, %v1505_v1 }
  0xba   : > { %393 = vmatpush.xpose.msrb.mxu3 %v1654_v32  ;;  %1306 = vmatpush.msk.msrb.mxu1 %vm276_vm1, %v1505_v1 }
  0xbd   : > { %394 = vmatmul.f32.vlgmr.msrb.gmra.mxu3 %v1654_v32  ;;  %1303 = vmatmul.msk.f32.vlgmr.msrb.gmra.mxu0 %vm403_vm2, %v1662_v44 }
  0xbe   : > { %351 = vmatmul.f32.gmra.mxu1 %v1629_v24 }
  0xbf   : > { %374 = vmatmul.f32.gmra.mxu2 %v1631_v25 }
  0xc5   : > { %397 = vmatmul.f32.gmra.mxu3 %v1645_v31  ;;  %1304 = vmatmul.msk.f32.gmra.mxu0 %vm403_vm2, %v1670_v54 }
 0x132   : > { %v326_v38 = vpop.f32.mrf.mxu0 }
 0x133   : > { %v349_v34 = vpop.f32.mrf.mxu1 }
 0x134   : > { %v350_v40 = vadd.f32 %v349_v34, %v326_v38 }
 0x138   : > { %v329_v35 = vpop.f32.mrf.mxu3 }
 0x13a   : > { %v372_v39 = vpop.f32.mrf.mxu2 }
 0x13b   : > { %v373_v41 = vadd.f32 %v372_v39, %v350_v40  ;;  %v352_v47 = vpop.f32.mrf.mxu1 }
 0x13c   : > { %v353_v50 = vadd.f32 %v352_v47, %v329_v35 }
 0x140   : > { %v395_v42 = vpop.f32.mrf.mxu3 }
 0x141   : > { %v1664_v45 = vadd.f32 %v395_v42, %v373_v41 }
 0x142   : > { %v375_v49 = vpop.f32.mrf.mxu2 }
 0x143   : > { %v401_v48 = vmul.f32 %v1662_v44, %v1664_v45  ;;  %v376_v52 = vadd.f32 %v375_v49, %v353_v50 }
 0x145   : > { %v404_v51 = vsel %vm403_vm2, %v401_v48, 0.0 }
 0x146   : > { %405 = vadd.xlane.f32.xlu1 %v404_v51 }
 0x148   : > { %v398_v53 = vpop.f32.mrf.mxu3 }
 0x149   : > { %v1672_v55 = vadd.f32 %v398_v53, %v376_v52 }
 0x14b   : > { %v402_v56 = vmul.f32 %v1670_v54, %v1672_v55 }
 0x14d   : > { %v407_v57 = vsel %vm403_vm2, %v402_v56, 0.0 }
 0x14e   : > { %408 = vadd.xlane.f32.xlu1 %v407_v57 }
 0x1b9   : > { %v406_v2 = vpop.xlane.xlu1 %405 }
 0x1ba   : > { %v417_v3 = vmul.f32 %v416_v0, %v406_v2 }
 0x1bc   : > { %1444 = vrsqrt.f32 %v417_v3  ;;  %vm426_vm5 = vcmp.eq.f32.partialorder %v417_v3, inf  ;;  %v429_v16 = vand.u32 2147483648, %v417_v3  ;;  %vm428_vm6 = vcmp.eq.f32.partialorder %v417_v3, 0.0 }
 0x1c1   : > { %v409_v4 = vpop.xlane.xlu1 %408 }
 0x1c2   : > { %v1445_v5 = vpop.eup %1444  ;;  %v418_v6 = vmul.f32 %v416_v0, %v409_v4 }
 0x1c3   : > { %v420_v7 = vmul.f32 %v1445_v5, %v417_v3 }
 0x1c4   : > { %1446 = vrsqrt.f32 %v418_v6  ;;  %vm438_vm7 = vcmp.eq.f32.partialorder %v418_v6, inf  ;;  %v441_v27 = vand.u32 2147483648, %v418_v6  ;;  %vm440_vm8 = vcmp.eq.f32.partialorder %v418_v6, 0.0 }
 0x1c5   : > { %v421_v8 = vmul.f32 %v1445_v5, %v420_v7 }
 0x1c7   : > { %v422_v9 = vmul.f32 0.5, %v421_v8 }
 0x1c9   : > { %v423_v10 = vsub.f32 1.5, %v422_v9 }
 0x1ca   : > { %v1447_v11 = vpop.eup %1446 }
 0x1cb   : > { %v424_v12 = vmul.f32 %v1445_v5, %v423_v10  ;;  %v432_v13 = vmul.f32 %v1447_v11, %v418_v6 }
 0x1cd   : > { %v425_v14 = vmul.f32 %v424_v12, %v417_v3  ;;  %v433_v15 = vmul.f32 %v1447_v11, %v432_v13  ;;  %v491_v12 = vmul.f32 0.001, %v1670_v54 }
 0x1cf   : > { %v427_v17 = vsel %vm426_vm5, %v417_v3, %v425_v14  ;;  %v434_v18 = vmul.f32 0.5, %v433_v15 }
 0x1d0   : > { %v430_v19 = vsel %vm428_vm6, %v429_v16, %v427_v17 }
 0x1d1   : > { %v435_v20 = vsub.f32 1.5, %v434_v18  ;;  %v443_v21 = vadd.f32 1e-05, %v430_v19 }
 0x1d3   : > { %v436_v22 = vmul.f32 %v1447_v11, %v435_v20  ;;  %1448 = vrcp.f32 %v443_v21  ;;  %v456_v42 = vand.u32 2147483648, %v443_v21  ;;  %vm450_vm10 = vweird.f32 %v443_v21  ;;  %v552_v20 = vpop.f32.mrf.mxu0 }
 0x1d4   : > { %v454_v43 = vand.u32 2147483647, %v443_v21  ;;  %v490_v11 = vmul.f32 0.001, %v1662_v44  ;;  %1307 = vmatmul.msk.f32.vlgmr.msrb.gmra.mxu1 %vm403_vm2, %v552_v20 }
 0x1d5   : > { %v437_v26 = vmul.f32 %v436_v22, %v418_v6  ;;  %v457_v49 = vor.u32 1.1754944e-38, %v456_v42 }
 0x1d6   : > { %vm455_vm12 = vcmp.eq.f32.partialorder %v454_v43, 8.507059e+37 }
 0x1d7   : > { %v439_v33 = vsel %vm438_vm7, %v418_v6, %v437_v26 }
 0x1d8   : > { %v442_v34 = vsel %vm440_vm8, %v441_v27, %v439_v33 }
 0x1d9   : > { %v1449_v35 = vpop.eup %1448  ;;  %v444_v36 = vadd.f32 1e-05, %v442_v34 }
 0x1da   : > { %v446_v37 = vmul.f32 %v1449_v35, %v443_v21  ;;  %vm451_vm9 = vweird.f32 %v1449_v35 }
 0x1db   : > { %1450 = vrcp.f32 %v444_v36  ;;  %vm452_vm11 = vmor %vm450_vm10, %vm451_vm9  ;;  %v471_v50 = vand.u32 2147483648, %v444_v36  ;;  %v469_v52 = vand.u32 2147483647, %v444_v36  ;;  %vm465_vm14 = vweird.f32 %v444_v36  ;;  %v555_v21 = vpop.f32.mrf.mxu0 }
 0x1dc   : > { %v447_v38 = vsub.f32 1.0, %v446_v37  ;;  %1308 = vmatmul.msk.f32.gmra.mxu1 %vm403_vm2, %v555_v21 }
 0x1dd   : > { %v472_v57 = vor.u32 1.1754944e-38, %v471_v50  ;;  %vm470_vm0 = vcmp.eq.f32.partialorder %v469_v52, 8.507059e+37 }
 0x1de   : > { %v448_v39 = vmul.f32 %v1449_v35, %v447_v38 }
 0x1e0   : > { %v449_v40 = vadd.f32 %v1449_v35, %v448_v39 }
 0x1e1   : > { %v1451_v41 = vpop.eup %1450 }
 0x1e2   : > { %v461_v46 = vmul.f32 %v1451_v41, %v444_v36  ;;  %v453_v47 = vsel %vm452_vm11, %v1449_v35, %v449_v40  ;;  %vm466_vm13 = vweird.f32 %v1451_v41 }
 0x1e3   : > { %v458_v53 = vsel %vm455_vm12, %v457_v49, %v453_v47  ;;  %vm467_vm15 = vmor %vm465_vm14, %vm466_vm13 }
 0x1e4   : > { %v462_v48 = vsub.f32 1.0, %v461_v46  ;;  %v475_v59 = vmul.f32 %v1662_v44, %v458_v53  ;;  %v486_v7 = vmul.f32 %v458_v53, %v1664_v45 }
 0x1e6   : > { %v463_v51 = vmul.f32 %v1451_v41, %v462_v48  ;;  %v477_v62 = vsel %vm403_vm2, %v475_v59, 0.0 }
 0x1e8   : > { %v464_v56 = vadd.f32 %v1451_v41, %v463_v51 }
 0x1ea   : > { %v468_v58 = vsel %vm467_vm15, %v1451_v41, %v464_v56 }
 0x1eb   : > { %v473_v60 = vsel %vm470_vm0, %v472_v57, %v468_v58 }
 0x1ec   : > { %v476_v61 = vmul.f32 %v1670_v54, %v473_v60  ;;  %v487_v8 = vmul.f32 %v473_v60, %v1672_v55 }
 0x1ee   : > { %v478_v63 = vsel %vm403_vm2, %v476_v61, 0.0 }
 0x1ef   : > { %v479_v0 = vadd.f32 %v478_v63, %v477_v62 }
 0x1f1   : > { %v480_v1 = vrot.slane %v479_v0, 4 }
 0x1f3   : > { %v481_v2 = vadd.f32 %v480_v1, %v479_v0 }
 0x1f5   : > { %v482_v3 = vrot.slane %v481_v2, 2 }
 0x1f7   : > { %v483_v4 = vadd.f32 %v482_v3, %v481_v2 }
 0x1f9   : > { %v484_v5 = vrot.slane %v483_v4, 1 }
 0x1fb   : > { %v1689_v6 = vadd.f32 %v484_v5, %v483_v4  ;;  %v588_v4 = vmul.f32 1.5, %v1670_v54 }
 0x1fd   : > { %v488_v9 = vmul.f32 %v486_v7, %v1689_v6  ;;  %v489_v10 = vmul.f32 %v487_v8, %v1689_v6  ;;  %v587_v7 = vmul.f32 1.5, %v1662_v44 }
 0x1ff   : > { %v492_v13 = vmul.f32 0.001953125, %v488_v9  ;;  %v493_v14 = vmul.f32 0.001953125, %v489_v10 }
 0x201   : > { %v494_v15 = vadd.f32 %v492_v13, %v490_v11  ;;  %v495_v16 = vadd.f32 %v493_v14, %v491_v12 }
 0x203   : > { %v496_v17 = vmul.f32 %v1662_v44, %v494_v15  ;;  %v497_v18 = vmul.f32 %v1670_v54, %v495_v16 }
 0x205   : > { %v498_v45 = vsel %vm403_vm2, %v496_v17, 0.0  ;;  %v499_v55 = vsel %vm403_vm2, %v497_v18, 0.0 }
 0x206   : > { %v500_v19 = vadd.f32 %v499_v55, %v498_v45 }
 0x208   : > { %501 = vadd.xlane.f32.xlu2 %v500_v19 }
 0x251   : > { %v581_v52 = vpop.f32.mrf.mxu1 }
 0x259   : > { %v584_v59 = vpop.f32.mrf.mxu1 }
 0x27b   : > { %v502_v22 = vpop.xlane.xlu2 %501 }
 0x27c   : > { %v503_v26 = vrot.slane %v502_v22, 4 }
 0x27e   : > { %v504_v27 = vadd.f32 %v503_v26, %v502_v22 }
 0x280   : > { %v505_v33 = vrot.slane %v504_v27, 2 }
 0x282   : > { %v506_v34 = vadd.f32 %v505_v33, %v504_v27 }
 0x284   : > { %v507_v35 = vrot.slane %v506_v34, 1 }
 0x286   : > { %v508_v36 = vadd.f32 %v507_v35, %v506_v34 }
 0x288   : > { %1359 = vpush %v508_v36 }
 0x2b9   : > { %s1360_s22 = spop %1359 }
 0x2ba   : > { %v510_v37 = vstv %s1360_s22 }
 0x2bb   : > { %1452 = vrcp.f32 %v510_v37  ;;  %v522_v41 = vand.u32 2147483648, %v510_v37  ;;  %v520_v43 = vand.u32 2147483647, %v510_v37  ;;  %vm516_vm3 = vweird.f32 %v510_v37 }
 0x2bd   : > { %v523_v47 = vor.u32 1.1754944e-38, %v522_v41  ;;  %vm521_vm5 = vcmp.eq.f32.partialorder %v520_v43, 8.507059e+37 }
 0x2c1   : > { %v1453_v38 = vpop.eup %1452 }
 0x2c2   : > { %v512_v39 = vmul.f32 %v1453_v38, %v510_v37  ;;  %vm517_vm1 = vweird.f32 %v1453_v38 }
 0x2c3   : > { %vm518_vm4 = vmor %vm516_vm3, %vm517_vm1 }
 0x2c4   : > { %v513_v40 = vsub.f32 1.0, %v512_v39 }
 0x2c6   : > { %v514_v42 = vmul.f32 %v1453_v38, %v513_v40 }
 0x2c8   : > { %v515_v46 = vadd.f32 %v1453_v38, %v514_v42 }
 0x2ca   : > { %v519_v48 = vsel %vm518_vm4, %v1453_v38, %v515_v46 }
 0x2cb   : > { %v524_v49 = vsel %vm521_vm5, %v523_v47, %v519_v48 }
 0x2cc   : > { %1361 = vpush %v524_v49 }
 0x2fd   : > { %s1362_s23 = spop %1361 }
 0x2fe   : > { %v526_v50 = vstv %s1362_s23 }
 0x2ff   : > { %1454 = vrsqrt.f32 %v526_v50  ;;  %v1703_v51 = vmul.f32 %v526_v50, %v495_v16  ;;  %v1707_v53 = vmul.f32 %v526_v50, %v494_v15  ;;  %vm1002_vm6 = vcmp.eq.f32.partialorder %v526_v50, inf }
 0x300   : > { %v1005_v0 = vand.u32 2147483648, %v526_v50  ;;  %vm1004_vm7 = vcmp.eq.f32.partialorder %v526_v50, 0.0 }
 0x301   : > { %609 = vmatpush.msrb.mxu2 %v1703_v51  ;;  %702 = vmatpush.msra.mxu1 %v1703_v51 }
 0x303   : > { %610 = vmatpush.msrb.mxu2 %v1707_v53  ;;  %703 = vmatpush.msra.mxu1 %v1707_v53 }
 0x304   : > { %1309 = vmatmul.msk.f32.vlgmr.msrb.gmra.mxu2 %vm403_vm2, %v581_v52 }
 0x305   : > { %v1455_v56 = vpop.eup %1454 }
 0x306   : > { %v996_v57 = vmul.f32 %v1455_v56, %v526_v50 }
 0x308   : > { %v997_v58 = vmul.f32 %v1455_v56, %v996_v57 }
 0x30a   : > { %v998_v60 = vmul.f32 0.5, %v997_v58 }
 0x30c   : > { %1310 = vmatmul.msk.f32.gmra.mxu2 %vm403_vm2, %v584_v59  ;;  %v999_v61 = vsub.f32 1.5, %v998_v60 }
 0x30e   : > { %v1000_v62 = vmul.f32 %v1455_v56, %v999_v61  ;;  %v1013_v56 = vld [vmem:[%s260_s20] sm:$0xff] }
 0x310   : > { %v1001_v63 = vmul.f32 %v1000_v62, %v526_v50 }
 0x312   : > { %v1003_v1 = vsel %vm1002_vm6, %v526_v50, %v1001_v63 }
 0x313   : > { %v1006_v2 = vsel %vm1004_vm7, %v1005_v0, %v1003_v1 }
 0x314   : > { %1363 = vpush %v1006_v2 }
 0x345   : > { %s1364_s27 = spop %1363 }
 0x346   : > { %v1008_v61 = vstv %s1364_s27 }
 0x387   : > { %v612_v3 = vpop.f32.mrf.mxu2 }
 0x388   : > { %v618_v8 = vmul.f32 0.5, %v612_v3 }
 0x38a   : > { %v620_v11 = vsub.f32 %v587_v7, %v618_v8 }
 0x38c   : > { %v680_v45 = vmul.f32 1.5, %v620_v11 }
 0x38f   : > { %v615_v5 = vpop.f32.mrf.mxu2 }
 0x390   : > { %v619_v9 = vmul.f32 0.5, %v615_v5 }
 0x392   : > { %v621_v10 = vsub.f32 %v588_v4, %v619_v9 }
 0x394   : > { %642 = vmatpush.msra.mxu3 %v621_v10  ;;  %671 = vmatpush.msra.mxu0 %v621_v10  ;;  %v681_v17 = vmul.f32 1.5, %v621_v10 }
 0x396   : > { %643 = vmatpush.msra.mxu3 %v620_v11  ;;  %672 = vmatpush.msra.mxu0 %v620_v11 }
 0x397   : > { %1311 = vmatmul.msk.f32.vlgmr.msra.gmra.mxu3 %vm403_vm2, %v620_v11 }
 0x398   : > { %795 = vmatpush.msrb.mxu0 %v1703_v51 }
 0x39a   : > { %796 = vmatpush.msrb.mxu0 %v1707_v53 }
 0x39f   : > { %1312 = vmatmul.msk.f32.gmra.mxu3 %vm403_vm2, %v621_v10 }
 0x41a   : > { %v645_v54 = vpop.f32.mrf.mxu3 }
 0x41b   : > { %1313 = vmatmul.msk.f32.vlgmr.msra.gmra.mxu0 %vm403_vm2, %v645_v54 }
 0x422   : > { %v648_v44 = vpop.f32.mrf.mxu3 }
 0x423   : > { %1314 = vmatmul.msk.f32.gmra.mxu0 %vm403_vm2, %v648_v44 }
 0x498   : > { %v674_v12 = vpop.f32.mrf.mxu0 }
 0x499   : > { %1315 = vmatmul.msk.f32.vlgmr.msra.gmra.mxu1 %vm403_vm2, %v674_v12 }
 0x4a0   : > { %v677_v13 = vpop.f32.mrf.mxu0 }
 0x4a1   : > { %1316 = vmatmul.msk.f32.gmra.mxu1 %vm403_vm2, %v677_v13 }
 0x516   : > { %v705_v14 = vpop.f32.mrf.mxu1 }
 0x517   : > { %v711_v16 = vmul.f32 0.5, %v705_v14 }
 0x519   : > { %v713_v19 = vsub.f32 %v680_v45, %v711_v16 }
 0x51b   : > { %v773_v37 = vmul.f32 1.5, %v713_v19 }
 0x51e   : > { %v708_v15 = vpop.f32.mrf.mxu1 }
 0x51f   : > { %v712_v18 = vmul.f32 0.5, %v708_v15 }
 0x521   : > { %v714_v55 = vsub.f32 %v681_v17, %v712_v18 }
 0x523   : > { %735 = vmatpush.msra.mxu2 %v714_v55  ;;  %764 = vmatpush.msrb.mxu3 %v714_v55  ;;  %v774_v35 = vmul.f32 1.5, %v714_v55 }
 0x525   : > { %736 = vmatpush.msra.mxu2 %v713_v19  ;;  %765 = vmatpush.msrb.mxu3 %v713_v19 }
 0x526   : > { %1317 = vmatmul.msk.f32.vlgmr.msra.gmra.mxu2 %vm403_vm2, %v713_v19 }
 0x527   : > { %888 = vmatpush.msra.mxu3 %v1703_v51 }
 0x529   : > { %889 = vmatpush.msra.mxu3 %v1707_v53 }
 0x52e   : > { %1318 = vmatmul.msk.f32.gmra.mxu2 %vm403_vm2, %v714_v55 }
 0x5a9   : > { %v738_v20 = vpop.f32.mrf.mxu2 }
 0x5aa   : > { %1319 = vmatmul.msk.f32.vlgmr.msrb.gmra.mxu3 %vm403_vm2, %v738_v20 }
 0x5ab   : > { %1059 = vmatpush.msrb.mxu3 %v1631_v25 }
 0x5ad   : > { %1060 = vmatpush.msrb.mxu3 %v1641_v30 }
 0x5b1   : > { %v741_v21 = vpop.f32.mrf.mxu2 }
 0x5b2   : > { %1320 = vmatmul.msk.f32.gmra.mxu3 %vm403_vm2, %v741_v21 }
 0x62d   : > { %v767_v22 = vpop.f32.mrf.mxu3 }
 0x62e   : > { %1321 = vmatmul.msk.f32.vlgmr.msrb.gmra.mxu0 %vm403_vm2, %v767_v22 }
 0x635   : > { %v770_v26 = vpop.f32.mrf.mxu3 }
 0x636   : > { %1322 = vmatmul.msk.f32.gmra.mxu0 %vm403_vm2, %v770_v26 }
 0x6ab   : > { %v798_v27 = vpop.f32.mrf.mxu0 }
 0x6ac   : > { %v804_v34 = vmul.f32 0.5, %v798_v27 }
 0x6ae   : > { %v806_v39 = vsub.f32 %v773_v37, %v804_v34 }
 0x6b0   : > { %v866_v49 = vmul.f32 1.5, %v806_v39 }
 0x6b3   : > { %v801_v33 = vpop.f32.mrf.mxu0 }
 0x6b4   : > { %v805_v36 = vmul.f32 0.5, %v801_v33 }
 0x6b6   : > { %v807_v38 = vsub.f32 %v774_v35, %v805_v36 }
 0x6b8   : > { %828 = vmatpush.msrb.mxu1 %v807_v38  ;;  %857 = vmatpush.msrb.mxu2 %v807_v38  ;;  %v867_v47 = vmul.f32 1.5, %v807_v38 }
 0x6ba   : > { %829 = vmatpush.msrb.mxu1 %v806_v39  ;;  %858 = vmatpush.msrb.mxu2 %v806_v39 }
 0x6bb   : > { %1323 = vmatmul.msk.f32.vlgmr.msrb.gmra.mxu1 %vm403_vm2, %v806_v39 }
 0x6bc   : > { %981 = vmatpush.msra.mxu2 %v1703_v51 }
 0x6be   : > { %982 = vmatpush.msra.mxu2 %v1707_v53 }
 0x6c3   : > { %1324 = vmatmul.msk.f32.gmra.mxu1 %vm403_vm2, %v807_v38 }
 0x738   : > { %v831_v25 = vpop.f32.mrf.mxu1 }
 0x739   : > { %1325 = vmatmul.msk.f32.vlgmr.msrb.gmra.mxu2 %vm403_vm2, %v831_v25 }
 0x73a   : > { %1132 = vmatpush.msrb.mxu2 %v1629_v24 }
 0x73c   : > { %1133 = vmatpush.msrb.mxu2 %v1639_v29 }
 0x740   : > { %v834_v30 = vpop.f32.mrf.mxu1 }
 0x741   : > { %1326 = vmatmul.msk.f32.gmra.mxu2 %vm403_vm2, %v834_v30 }
 0x7bc   : > { %v860_v40 = vpop.f32.mrf.mxu2 }
 0x7bd   : > { %1327 = vmatmul.msk.f32.vlgmr.msra.gmra.mxu3 %vm403_vm2, %v860_v40 }
 0x7c4   : > { %v863_v41 = vpop.f32.mrf.mxu2 }
 0x7c5   : > { %1328 = vmatmul.msk.f32.gmra.mxu3 %vm403_vm2, %v863_v41 }
 0x840   : > { %v891_v42 = vpop.f32.mrf.mxu3 }
 0x841   : > { %v897_v46 = vmul.f32 0.5, %v891_v42 }
 0x843   : > { %v899_v24 = vsub.f32 %v866_v49, %v897_v46 }
 0x845   : > { %v959_v58 = vmul.f32 1.5, %v899_v24 }
 0x848   : > { %v894_v43 = vpop.f32.mrf.mxu3 }
 0x849   : > { %v898_v48 = vmul.f32 0.5, %v894_v43 }
 0x84b   : > { %v900_v50 = vsub.f32 %v867_v47, %v898_v48 }
 0x84d   : > { %921 = vmatpush.msra.mxu0 %v900_v50  ;;  %950 = vmatpush.msra.mxu1 %v900_v50  ;;  %v960_v2 = vmul.f32 1.5, %v900_v50 }
 0x84f   : > { %922 = vmatpush.msra.mxu0 %v899_v24  ;;  %951 = vmatpush.msra.mxu1 %v899_v24 }
 0x850   : > { %1329 = vmatmul.msk.f32.vlgmr.msra.gmra.mxu0 %vm403_vm2, %v899_v24 }
 0x851   : > { %1109 = vmatpush.msrb.mxu1 %v1627_v23  ;;  %1082 = vmatpush.msrb.mxu0 %v1645_v31  ;;  %v1012_v23 = vld [vmem:[%s254_s11 + $0x8] sm:$0xff]  ;;  %v1506_v31 = vmov 0  }
 0x852   : > { %1438 = vset.pattern.permute.xlu0 %v1506_v31  ;;  %1437 = vset.pattern.permute.xlu2 %v1506_v31 }
 0x853   : > { %1110 = vmatpush.msrb.mxu1 %v1637_v28  ;;  %1083 = vmatpush.msrb.mxu0 %v1654_v32  ;;  %v1011_v28 = vld [vmem:[%s254_s11] sm:$0xff]  ;;  %v1014_v32 = vld [vmem:[%s260_s20 + $0x8] sm:$0xff] }
 0x854   : > { %1024 = vperm.xlu0 %1438, %v1012_v23   ;;  %1019 = vperm.xlu2 %1437, %v1011_v28  }
 0x855   : > { %1439 = vset.pattern.permute.xlu1 %v1506_v31 }
 0x856   : > { %1031 = vperm.xlu1 %1439, %v1013_v56  }
 0x858   : > { %1330 = vmatmul.msk.f32.gmra.mxu0 %vm403_vm2, %v900_v50 }
 0x85c   : > { %1036 = vperm.xlu2 %1437, %v1014_v32  }
 0x8ae   : > { %v1020_v1 = vpop.permute.xlu2 %1019 }
 0x8b6   : > { %v1037_v16 = vpop.permute.xlu2 %1036 }
 0x8c6   : > { %v1025_v8 = vpop.permute.xlu0 %1024 }
 0x8c8   : > { %v1032_v11 = vpop.permute.xlu1 %1031 }
 0x8cd   : > { %v924_v29 = vpop.f32.mrf.mxu0 }
 0x8ce   : > { %1331 = vmatmul.msk.f32.vlgmr.msra.gmra.mxu1 %vm403_vm2, %v924_v29 }
 0x8d5   : > { %v927_v51 = vpop.f32.mrf.mxu0 }
 0x8d6   : > { %1332 = vmatmul.msk.f32.gmra.mxu1 %vm403_vm2, %v927_v51 }
 0x94b   : > { %v953_v52 = vpop.f32.mrf.mxu1 }
 0x94c   : > { %1333 = vmatmul.msk.f32.vlgmr.msra.gmra.mxu2 %vm403_vm2, %v953_v52 }
 0x953   : > { %v956_v53 = vpop.f32.mrf.mxu1 }
 0x954   : > { %1334 = vmatmul.msk.f32.gmra.mxu2 %vm403_vm2, %v956_v53 }
 0x9cf   : > { %v984_v57 = vpop.f32.mrf.mxu2 }
 0x9d0   : > { %v990_v59 = vmul.f32 0.5, %v984_v57 }
 0x9d2   : > { %v992_v60 = vsub.f32 %v959_v58, %v990_v59 }
 0x9d4   : > { %v1009_v62 = vmul.f32 %v1008_v61, %v992_v60 }
 0x9d6   : > { %v1015_v63 = vmul.f32 %v1009_v62, %v1689_v6 }
 0x9d7   : > { %v987_v0 = vpop.f32.mrf.mxu2 }
 0x9d8   : > { %v991_v3 = vmul.f32 0.5, %v987_v0  ;;  %v1027_v4 = vmul.f32 %v1020_v1, %v1015_v63 }
 0x9da   : > { %v993_v5 = vsub.f32 %v960_v2, %v991_v3  ;;  %1335 = vmatmul.msk.f32.vlgmr.msrb.gmra.mxu3 %vm403_vm2, %v1027_v4  ;;  %1337 = vmatmul.msk.f32.vlgmr.msrb.gmra.mxu0 %vm403_vm2, %v1027_v4 }
 0x9db   : > { %1339 = vmatmul.msk.f32.vlgmr.msrb.gmra.mxu1 %vm403_vm2, %v1027_v4  ;;  %1341 = vmatmul.msk.f32.vlgmr.msrb.gmra.mxu2 %vm403_vm2, %v1027_v4 }
 0x9dc   : > { %v1010_v7 = vmul.f32 %v1008_v61, %v993_v5 }
 0x9de   : > { %v1016_v9 = vmul.f32 %v1010_v7, %v1689_v6 }
 0x9e0   : > { %v1028_v10 = vmul.f32 %v1025_v8, %v1016_v9 }
 0x9e2   : > { %1336 = vmatmul.msk.f32.gmra.mxu3 %vm403_vm2, %v1028_v10  ;;  %1338 = vmatmul.msk.f32.gmra.mxu0 %vm403_vm2, %v1028_v10 }
 0x9e3   : > { %1340 = vmatmul.msk.f32.gmra.mxu1 %vm403_vm2, %v1028_v10  ;;  %1342 = vmatmul.msk.f32.gmra.mxu2 %vm403_vm2, %v1028_v10 }
 0xa57   : > { %v1085_v54 = vpop.f32.mrf.mxu0 }
 0xa58   : > { %v1112_v44 = vpop.f32.mrf.mxu1  ;;  %v1086_v12 = vadd.f32 %v1085_v54, %v1032_v11 }
 0xa59   : > { %v1113_v13 = vadd.f32 %v1112_v44, %v1032_v11 }
 0xa5a   : > { %1092 = vst [vmem:[%s248_s28 + $0x8] sm:$0xff] %v1086_v12 }
 0xa5b   : > { %1343 = vst [vmem:[%s248_s28 + $0x20] sm:$0xff] %v1113_v13 }
 0xa5d   : > { %v1062_v14 = vpop.f32.mrf.mxu3 }
 0xa5e   : > { %v1063_v6 = vadd.f32 %v1062_v14, %v1032_v11  ;;  %v1135_v15 = vpop.f32.mrf.mxu2 }
 0xa5f   : > { %v1136_v17 = vadd.f32 %v1135_v15, %v1032_v11  ;;  %v1088_v18 = vpop.f32.mrf.mxu0 }
 0xa60   : > { %1091 = vst [vmem:[%s248_s28] sm:$0xff] %v1063_v6  ;;  %v1089_v45 = vadd.f32 %v1088_v18, %v1037_v16  ;;  %v1115_v55 = vpop.f32.mrf.mxu1 }
 0xa61   : > { %1344 = vst [vmem:[%s248_s28 + $0x28] sm:$0xff] %v1136_v17  ;;  %v1116_v19 = vadd.f32 %v1115_v55, %v1037_v16 }
 0xa62   : > { %1094 = vst [vmem:[%s248_s28 + $0x18] sm:$0xff] %v1089_v45 }
 0xa63   : > { %1345 = vst [vmem:[%s248_s28 + $0x30] sm:$0xff] %v1116_v19 }
 0xa65   : > { %v1065_v20 = vpop.f32.mrf.mxu3 }
 0xa66   : > { %v1066_v21 = vadd.f32 %v1065_v20, %v1037_v16  ;;  %v1138_v22 = vpop.f32.mrf.mxu2 }
 0xa67   : > { %v1139_v26 = vadd.f32 %v1138_v22, %v1037_v16 }
 0xa68   : > { %1093 = vst [vmem:[%s248_s28 + $0x10] sm:$0xff] %v1066_v21 }
 0xa69   : > { %1346 = vst [vmem:[%s248_s28 + $0x38] sm:$0xff] %v1139_v26 }
 0xa6a   : > { %s1356_s30 = sshll.u32 %s1555_s16, 5  ;;  %s1170_s5 = sshll.u32 %s248_s28, 4  ;;  %s1171_s5 = int_to_ptr.vmem [resolvable:$true] %s1170_s5 }
 0xa6b   : > { %s1159_s22 = scalar_lea.hbm %s1812_s3, %s1356_s30  ;;  %s1507_s6 = smov 512  }
 0xa6c   : > { %s1172_s23 = sshll.u32 %s1159_s22, 4  ;;  %1374 = sst [smem:[#allocation9]] (%p1582_p9), %s1507_s6  ;;  %s1173_s23 = int_to_ptr.hbm [resolvable:$true] %s1172_s23 }
 0xa6d   : > { %s1508_s4 = smov 1024   ;;  %s1509_s8 = smov 2  }
 0xa6e   : > { %1375 = sst [smem:[#allocation9 + $0x1]] (%p1582_p9), %s1508_s4  ;;  %s1510_s16 = smov 256  }
 0xa6f   : > { %1376 = sst [smem:[#allocation9 + $0x2]] (%p1582_p9), %s1509_s8  ;;  %s1511_s9 = smov 16  }
 0xa70   : > { %1377 = sst [smem:[#allocation9 + $0x3]] (%p1582_p9), %s1510_s16  ;;  %s1512_s10 = smov [#allocation8]  }
 0xa71   : > { %1378 = sst [smem:[#allocation9 + $0x4]] (%p1582_p9), %s1510_s16  ;;  %s1513_s11 = smov 0  }
 0xa72   : > { %1379 = sst [smem:[#allocation9 + $0x5]] (%p1582_p9), %s1511_s9 }
 0xa73   : > { %1380 = dma.general (%p1582_p9), %s1171_s5, 1024, %s1173_s23, %s1147_s29, %s1512_s10, [#allocation9], %s1513_s11, 0  }
 0xa74 PF: > { %s1200_s17 = sand.u32 1, %s1482_s12   ;;  %p1383_p2 = pnand %p1285_p11, %p1586_p10 }
 0xa75   : > { %s1201_s19 = scalar_lea.sflag [#allocation4], %s1200_s17 }
 0xa76   : > { %p1384_p3 = pneg %p1383_p2 }
 0xa78   : > { %1477 = dma.done.wait (%p1384_p3), %s1201_s19, 1024  }
 0xa79   : > { %1479 = vsyncadd (%p1384_p3), %s1201_s19, 4294966272  ;;  %p16_p4 = scmp.ge.s32.totalorder %s1559_s18, 4   ;;  %s1817_s12 = smov %s1486_s13 }
 0xa7a   : > { %s1818_s13 = smov %s1490_s14  ;;  %s1819_s14 = smov %s1571_s21 }
 0xa7b   : > { %s1820_s15 = smov %s1559_s18  ;;  %18 = sbr.rel (!%p16_p4) target bundleno = 5 (0x5), region = 94 }
 0xa80   :  { %1207 = vsyncpa [#allocation3], 1 }
 0xa81   :  { %1209 = vsyncpa [#allocation3 + $0x1], 1 }
 0xa82   :  { %1210 = vsyncpa [#allocation4], 1 }
 0xa83   :  { %1212 = vsyncpa [#allocation4 + $0x1], 1 }

</bundles_post_ra>
